<compile_context>
chip_gen: v5e
topology: v5e:2x2
jax: 0.10.0
libtpu: 0.0.40
codegen_flags: <defaults>
</compile_context>

<pallas_src>
import functools

import jax
import jax.numpy as jnp
from jax import lax
from jax.experimental import pallas as pl
from jax.experimental.pallas import tpu as pltpu

LANE = 128            # TPU lane width
SUBLANE = 8           # f32 sublane granularity
MAX_BLOCK_B = 2048    # cap on batch rows per grid step


def _round_up(x, m):
    return pl.cdiv(x, m) * m


def _choose_block_b(batch):
    """Adaptive batch tile.

    <=256 rows: a single grid step (1-TC chips pay zero per-step overhead).
    Larger:     ~2 balanced steps so the "parallel" grid axis shards across
                v7x's two TensorCores, capped at MAX_BLOCK_B rows.
    """
    b = _round_up(batch, SUBLANE)
    if b <= 256:
        return b
    per_step = _round_up(pl.cdiv(b, 2), SUBLANE)
    return min(per_step, MAX_BLOCK_B)


def _policy_forward_kernel(x_ref, w1_ref, b1_ref, w2_ref, b2_ref, out_ref, *,
                           action_dim):
    # fc1: x @ W1 + b1, ReLU.  bf16 MXU inputs, f32 accumulation.
    x = x_ref[...].astype(jnp.bfloat16)
    h = jnp.dot(x, w1_ref[...], preferred_element_type=jnp.float32) + b1_ref[...]
    h = jnp.maximum(h, 0.0)

    # fc2 on lane-padded weights (padded columns/bias are zero).
    logits = jnp.dot(h.astype(jnp.bfloat16), w2_ref[...],
                     preferred_element_type=jnp.float32) + b2_ref[...]

    # Numerically stable softmax over the valid lanes only.  Padded lanes are
    # masked explicitly (no huge sentinel values ever reach exp) and the
    # normalization is an exact divide -> rows sum to 1 in f32.
    col = lax.broadcasted_iota(jnp.int32, logits.shape, 1)
    valid = col < action_dim
    neg_big = jnp.finfo(jnp.float32).min          # only flows through max/select
    m = jnp.max(jnp.where(valid, logits, neg_big), axis=-1, keepdims=True)
    shifted = jnp.where(valid, logits - m, 0.0)   # exp argument always <= 0, finite
    e = jnp.where(valid, jnp.exp(shifted), 0.0)
    denom = jnp.sum(e, axis=-1, keepdims=True)    # >= 1 always
    out_ref[...] = (e / denom).astype(out_ref.dtype)


def prepare_policy_params(w1, b1, w2, b2):
    """Pad / cast parameters once, outside the per-call path.

    w1: (state_dim, H), b1: (1, H), w2: (H, action_dim), b2: (1, action_dim).
    Weights -> bf16 (MXU inputs); biases stay f32 (added after accumulation).
    w2/b2 are zero-padded along the lane axis to a multiple of 128.
    """
    hidden, action_dim = w2.shape
    n_pad = _round_up(action_dim, LANE)
    w2p = jnp.zeros((hidden, n_pad), jnp.float32).at[:, :action_dim].set(w2)
    b2p = jnp.zeros((1, n_pad), jnp.float32).at[:, :action_dim].set(b2)
    return dict(
        w1=w1.astype(jnp.bfloat16),
        b1=b1.astype(jnp.float32),
        w2p=w2p.astype(jnp.bfloat16),
        b2p=b2p,
        action_dim=int(action_dim),
    )


@functools.partial(jax.jit, static_argnames=("action_dim",))
def policy_network_forward(state, w1, b1, w2p, b2p, *, action_dim):
    """state: (B, state_dim) f32 -> (B, action_dim) action probabilities."""
    B, state_dim = state.shape
    hidden = w1.shape[1]
    n_pad = w2p.shape[1]

    block_b = _choose_block_b(B)
    b_padded = _round_up(B, block_b)
    if b_padded != B:
        state = jnp.pad(state, ((0, b_padded - B), (0, 0)))
    grid = (b_padded // block_b,)

    flops = 2 * b_padded * (state_dim * hidden + hidden * n_pad)
    bytes_accessed = (4 * b_padded * state_dim                # x (f32)
                      + 2 * state_dim * hidden + 4 * hidden   # w1 (bf16), b1
                      + 2 * hidden * n_pad + 4 * n_pad        # w2p (bf16), b2p
                      + 4 * b_padded * n_pad)                 # out (f32)

    kernel = functools.partial(_policy_forward_kernel, action_dim=action_dim)

    out = pl.pallas_call(
        kernel,
        out_shape=jax.ShapeDtypeStruct((b_padded, n_pad), jnp.float32),
        grid=grid,
        in_specs=[
            # activations: tiled over the batch grid
            pl.BlockSpec((block_b, state_dim), lambda i: (i, 0)),
            # weights/biases: constant index maps -> VMEM-resident across steps
            pl.BlockSpec((state_dim, hidden), lambda i: (0, 0)),
            pl.BlockSpec((1, hidden), lambda i: (0, 0)),
            pl.BlockSpec((hidden, n_pad), lambda i: (0, 0)),
            pl.BlockSpec((1, n_pad), lambda i: (0, 0)),
        ],
        out_specs=pl.BlockSpec((block_b, n_pad), lambda i: (i, 0)),
        compiler_params=pltpu.CompilerParams(
            dimension_semantics=("parallel",),   # megacore sharding on v7x
        ),
        cost_estimate=pl.CostEstimate(
            flops=flops,
            transcendentals=b_padded * n_pad,
            bytes_accessed=bytes_accessed,
        ),
    )(state, w1, b1, w2p, b2p)

    # TODO(synk): for very large batches the (B, 128) f32 output slab could be
    # shrunk ~32x by packing 32 rows' probabilities per 128-lane row in-kernel.
    return out[:B, :action_dim]


def init_linear_params(key, in_features, out_features):
    # Mimics nn.Linear default init: U(-1/sqrt(fan_in), 1/sqrt(fan_in)).
    kw, kb = jax.random.split(key)
    bound = 1.0 / jnp.sqrt(jnp.float32(in_features))
    w = jax.random.uniform(kw, (in_features, out_features), jnp.float32, -bound, bound)
    b = jax.random.uniform(kb, (1, out_features), jnp.float32, -bound, bound)
    return w, b


def _reference(state, w1, b1, w2, b2):
    h = jnp.maximum(state @ w1 + b1, 0.0)
    return jax.nn.softmax(h @ w2 + b2, axis=-1)


if __name__ == "__main__":
    key = jax.random.PRNGKey(0)
    k_fc1, k_fc2, k_s1, k_s2 = jax.random.split(key, 4)

    state_dim = 4        # e.g. CartPole observation
    hidden_size = 128    # PolicyNetwork default
    action_dim = 2

    w1, b1 = init_linear_params(k_fc1, state_dim, hidden_size)
    w2, b2 = init_linear_params(k_fc2, hidden_size, action_dim)
    params = prepare_policy_params(w1, b1, w2, b2)

    def forward(state):
        return policy_network_forward(
            state, params["w1"], params["b1"], params["w2p"], params["b2p"],
            action_dim=params["action_dim"])

    # Case 1: small batch -> single grid step.
    batch = 32
    state = jax.random.normal(k_s1, (batch, state_dim), jnp.float32)
    probs = jax.block_until_ready(forward(state))
    probs_ref = _reference(state, w1, b1, w2, b2)
    assert probs.shape == (batch, action_dim)
    assert bool(jnp.all(jnp.isfinite(probs)))
    # exact in-kernel normalization -> rows sum to 1 at f32 precision
    assert jnp.allclose(jnp.sum(probs, axis=-1), 1.0, atol=1e-5)
    # bf16 MXU inputs -> relaxed tolerance vs the f32 reference
    assert jnp.allclose(probs, probs_ref, atol=2e-2, rtol=2e-2)

    # Case 2: ragged batch -> exercises batch padding + multi-step "parallel" grid.
    batch2 = 300
    state2 = jax.random.normal(k_s2, (batch2, state_dim), jnp.float32)
    probs2 = jax.block_until_ready(forward(state2))
    probs2_ref = _reference(state2, w1, b1, w2, b2)
    assert probs2.shape == (batch2, action_dim)
    assert bool(jnp.all(jnp.isfinite(probs2)))
    assert jnp.allclose(jnp.sum(probs2, axis=-1), 1.0, atol=1e-5)
    assert jnp.allclose(probs2, probs2_ref, atol=2e-2, rtol=2e-2)

    print("KERNEL_OK")
</pallas_src>

<mosaic_0001>
module attributes {stable_mosaic.version = 11 : i64} {
  func.func @_policy_forward_kernel(%arg0: i32, %arg1: memref<32x4xf32, #tpu.memory_space<vmem>>, %arg2: memref<4x128xbf16, #tpu.memory_space<vmem>>, %arg3: memref<1x128xf32, #tpu.memory_space<vmem>>, %arg4: memref<128x128xbf16, #tpu.memory_space<vmem>>, %arg5: memref<1x128xf32, #tpu.memory_space<vmem>>, %arg6: memref<32x128xf32, #tpu.memory_space<vmem>>) attributes {dimension_semantics = [#tpu.dimension_semantics<parallel>], iteration_bounds = array<i64: 1>, scalar_prefetch = 0 : i64, scratch_operands = 0 : i64, tpu.core_type = #tpu.core_type<tc>, window_params = [{transform_indices = @transform_0, window_bounds = array<i64: 32, 4>}, {pipeline_mode = #tpu.pipeline_mode<synchronous>, transform_indices = @transform_1, window_bounds = array<i64: 4, 128>}, {pipeline_mode = #tpu.pipeline_mode<synchronous>, transform_indices = @transform_2, window_bounds = array<i64: 1, 128>}, {pipeline_mode = #tpu.pipeline_mode<synchronous>, transform_indices = @transform_3, window_bounds = array<i64: 128, 128>}, {pipeline_mode = #tpu.pipeline_mode<synchronous>, transform_indices = @transform_4, window_bounds = array<i64: 1, 128>}, {transform_indices = @transform_5, window_bounds = array<i64: 32, 128>}]} {
    %c0 = arith.constant 0 : index
    %c0_0 = arith.constant 0 : index
    %0 = vector.load %arg1[%c0, %c0_0] : memref<32x4xf32, #tpu.memory_space<vmem>>, vector<32x4xf32>
    %1 = arith.truncf %0 : vector<32x4xf32> to vector<32x4xbf16>
    %c0_1 = arith.constant 0 : index
    %c0_2 = arith.constant 0 : index
    %2 = vector.load %arg2[%c0_1, %c0_2] : memref<4x128xbf16, #tpu.memory_space<vmem>>, vector<4x128xbf16>
    %cst = arith.constant dense<0.000000e+00> : vector<32x128xf32>
    %3 = tpu.matmul %1, %2, %cst {dimension_numbers = #tpu.dot_dimension_numbers<[1], [0], [0], [1], [0, 0, 1, 1], [], []>} : vector<32x4xbf16>, vector<4x128xbf16>, vector<32x128xf32> -> vector<32x128xf32>
    %c0_3 = arith.constant 0 : index
    %c0_4 = arith.constant 0 : index
    %4 = vector.load %arg3[%c0_3, %c0_4] : memref<1x128xf32, #tpu.memory_space<vmem>>, vector<1x128xf32>
    %5 = vector.broadcast %4 : vector<1x128xf32> to vector<32x128xf32>
    %6 = arith.addf %3, %5 : vector<32x128xf32>
    %cst_5 = arith.constant 0.000000e+00 : f32
    %7 = vector.broadcast %cst_5 : f32 to vector<32x128xf32>
    %8 = arith.maximumf %6, %7 : vector<32x128xf32>
    %9 = arith.truncf %8 : vector<32x128xf32> to vector<32x128xbf16>
    %c0_6 = arith.constant 0 : index
    %c0_7 = arith.constant 0 : index
    %10 = vector.load %arg4[%c0_6, %c0_7] : memref<128x128xbf16, #tpu.memory_space<vmem>>, vector<128x128xbf16>
    %cst_8 = arith.constant dense<0.000000e+00> : vector<32x128xf32>
    %11 = tpu.matmul %9, %10, %cst_8 {dimension_numbers = #tpu.dot_dimension_numbers<[1], [0], [0], [1], [0, 0, 1, 1], [], []>} : vector<32x128xbf16>, vector<128x128xbf16>, vector<32x128xf32> -> vector<32x128xf32>
    %c0_9 = arith.constant 0 : index
    %c0_10 = arith.constant 0 : index
    %12 = vector.load %arg5[%c0_9, %c0_10] : memref<1x128xf32, #tpu.memory_space<vmem>>, vector<1x128xf32>
    %13 = vector.broadcast %12 : vector<1x128xf32> to vector<32x128xf32>
    %14 = arith.addf %11, %13 : vector<32x128xf32>
    %15 = tpu.iota {dimensions = array<i32: 1>} : vector<32x128xi32>
    %c2_i32 = arith.constant 2 : i32
    %16 = vector.broadcast %c2_i32 : i32 to vector<32x128xi32>
    %17 = arith.cmpi slt, %15, %16 : vector<32x128xi32>
    %cst_11 = arith.constant -3.40282347E+38 : f32
    %18 = vector.broadcast %cst_11 : f32 to vector<32x128xf32>
    %19 = arith.select %17, %14, %18 : vector<32x128xi1>, vector<32x128xf32>
    %cst_12 = arith.constant dense<0xFF800000> : vector<32xf32>
    %20 = vector.multi_reduction <maximumf>, %19, %cst_12 [1] : vector<32x128xf32> to vector<32xf32>
    %21 = vector.shape_cast %20 : vector<32xf32> to vector<32x1xf32>
    %22 = vector.broadcast %21 : vector<32x1xf32> to vector<32x128xf32>
    %23 = arith.subf %14, %22 : vector<32x128xf32>
    %cst_13 = arith.constant 0.000000e+00 : f32
    %24 = vector.broadcast %cst_13 : f32 to vector<32x128xf32>
    %25 = arith.select %17, %23, %24 : vector<32x128xi1>, vector<32x128xf32>
    %26 = math.exp %25 : vector<32x128xf32>
    %cst_14 = arith.constant 0.000000e+00 : f32
    %27 = vector.broadcast %cst_14 : f32 to vector<32x128xf32>
    %28 = arith.select %17, %26, %27 : vector<32x128xi1>, vector<32x128xf32>
    %cst_15 = arith.constant dense<0.000000e+00> : vector<32xf32>
    %29 = vector.multi_reduction <add>, %28, %cst_15 [1] : vector<32x128xf32> to vector<32xf32>
    %30 = vector.shape_cast %29 : vector<32xf32> to vector<32x1xf32>
    %31 = vector.broadcast %30 : vector<32x1xf32> to vector<32x128xf32>
    %32 = arith.divf %28, %31 : vector<32x128xf32>
    %c0_16 = arith.constant 0 : index
    %c0_17 = arith.constant 0 : index
    %33 = vector.load %arg6[%c0_16, %c0_17] : memref<32x128xf32, #tpu.memory_space<vmem>>, vector<32x128xf32>
    tpu.vector_store %arg6[%c0_16, %c0_17], %32 {strides = array<i32>} : memref<32x128xf32, #tpu.memory_space<vmem>>, vector<32x128xf32>,
    return
  }
  func.func @transform_0(%arg0: i32) -> (i32, i32) {
    %c0_i32 = arith.constant 0 : i32
    %c0_i32_0 = arith.constant 0 : i32
    return %arg0, %c0_i32 : i32, i32
  }
  func.func @transform_1(%arg0: i32) -> (i32, i32) {
    %c0_i32 = arith.constant 0 : i32
    %c0_i32_0 = arith.constant 0 : i32
    %c0_i32_1 = arith.constant 0 : i32
    return %c0_i32, %c0_i32_0 : i32, i32
  }
  func.func @transform_2(%arg0: i32) -> (i32, i32) {
    %c0_i32 = arith.constant 0 : i32
    %c0_i32_0 = arith.constant 0 : i32
    %c0_i32_1 = arith.constant 0 : i32
    return %c0_i32, %c0_i32_0 : i32, i32
  }
  func.func @transform_3(%arg0: i32) -> (i32, i32) {
    %c0_i32 = arith.constant 0 : i32
    %c0_i32_0 = arith.constant 0 : i32
    %c0_i32_1 = arith.constant 0 : i32
    return %c0_i32, %c0_i32_0 : i32, i32
  }
  func.func @transform_4(%arg0: i32) -> (i32, i32) {
    %c0_i32 = arith.constant 0 : i32
    %c0_i32_0 = arith.constant 0 : i32
    %c0_i32_1 = arith.constant 0 : i32
    return %c0_i32, %c0_i32_0 : i32, i32
  }
  func.func @transform_5(%arg0: i32) -> (i32, i32) {
    %c0_i32 = arith.constant 0 : i32
    %c0_i32_0 = arith.constant 0 : i32
    return %arg0, %c0_i32 : i32, i32
  }
}

</mosaic_0001>

<bundles_post_ra>
// kernel: policy_network_forward.1
= control target key start
LH: loop header
LB: loop body
LE: loop exit
PB: predicated region body
PF: predicated region fallthrough
CT: control target
= control target key end

     0   :  { %10 = vsyncpa [#allocation3], 0  ;;  %s380_s21 = smov [#allocation2]   ;;  %s381_s23 = smov 64   ;;  %s471_s0 = inlined_call_operand.vmem [shape: f32[32,4], index: 0, kind: input, shape index: {}]   ;;  %s472_s1 = inlined_call_operand.vmem [shape: bf16[4,128], index: 1, kind: input, shape index: {}]   ;;  %s473_s2 = inlined_call_operand.vmem [shape: f32[1,128], index: 2, kind: input, shape index: {}]   ;;  %s474_s3 = inlined_call_operand.hbm [shape: bf16[128,128], index: 3, kind: input, shape index: {}]   ;;  %s475_s4 = inlined_call_operand.vmem [shape: f32[1,128], index: 4, kind: input, shape index: {}]   ;;  %s476_s5 = inlined_call_operand.vmem [shape: f32[32,128], index: 5, kind: output, shape index: {}]  }
   0x1   :  { %s21_s20 = sshll.u32 %s474_s3, 4  ;;  %s23_s22 = sshll.u32 %s380_s21, 4  ;;  %s22_s20 = int_to_ptr.hbm [resolvable:$true] %s21_s20  ;;  %s24_s22 = int_to_ptr.vmem [resolvable:$true] %s23_s22 }
   0x2   :  { %s382_s24 = smov 4  }
   0x3   :  { %29 = dma.hbm_to_vmem [thread:$0]  %s22_s20, 1024, %s24_s22, [#allocation3], %s381_s23, %s381_s23, %s382_s24  }
   0x4   :  { %378 = dma.done.wait [#allocation3], 1024  }
   0x5   :  { %379 = vsyncadd [#allocation3], 4294966272  ;;  %vm55_vm0 = vcmask 1041408   ;;  %v43_v0 = vld [vmem:[%s472_s1] sm:$0x3]  ;;  %v38_v2 = vld [vmem:[%s471_s0 + $0x8] sm:$0xff]  ;;  %v171_v31 = vlaneseq }
   0x6   :  { %v37_v1 = vld [vmem:[%s471_s0] sm:$0xff]  ;;  %v57_v3 = vsel %vm55_vm0, %v43_v0, 0  ;;  %v324_v5 = vld [vmem:[#allocation2 + $0x38] sm:$0xff]  ;;  %vm48_vm1 = vcmask 31744   ;;  %v323_v6 = vld [vmem:[#allocation2 + $0x30] sm:$0xff] }
   0x7   :  { %v41_v4 = vpack.c.bf16 %v38_v2, %v37_v1  ;;  %66 = vmatpush.bf16.msra.mxu0 %v57_v3  ;;  %152 = vmatpush.bf16.msra.mxu1 %v324_v5  ;;  %v322_v7 = vld [vmem:[#allocation2 + $0x28] sm:$0xff]  ;;  %v321_v8 = vld [vmem:[#allocation2 + $0x20] sm:$0xff]  ;;  %v39_v9 = vld [vmem:[%s471_s0 + $0x10] sm:$0xff]  ;;  %v172_v32 = vand.u32 127, %v171_v31 }
   0x8   :  { %325 = vmatpush.bf16.msra.mxu2 %v324_v5  ;;  %v40_v10 = vld [vmem:[%s471_s0 + $0x18] sm:$0xff]  ;;  %v319_v13 = vld [vmem:[#allocation2 + $0x10] sm:$0xff]  ;;  %v318_v14 = vld [vmem:[#allocation2 + $0x8] sm:$0xff] }
   0x9   :  { %v42_v11 = vpack.c.bf16 %v40_v10, %v39_v9  ;;  %v320_v12 = vld [vmem:[#allocation2 + $0x18] sm:$0xff]  ;;  %v317_v15 = vld [vmem:[#allocation2] sm:$0xff]  ;;  %vm173_vm2 = vcmp.lt.s32.totalorder %v172_v32, 2 }
   0xa   :  { %283 = vmatmul.msk.bf16.vlgmr.msra.gmra.mxu0 %vm48_vm1, %v41_v4  ;;  %v336_v17 = vld [vmem:[%s473_s2] ss:$0 sm:$0xff] }
   0xb   :  { %153 = vmatpush.bf16.msra.mxu1 %v323_v6  ;;  %v337_v33 = vld [vmem:[%s475_s4] ss:$0 sm:$0xff] }
   0xc   :  { %326 = vmatpush.bf16.msra.mxu2 %v323_v6 }
   0xf   :  { %154 = vmatpush.bf16.msra.mxu1 %v322_v7 }
  0x10   :  { %327 = vmatpush.bf16.msra.mxu2 %v322_v7 }
  0x13   :  { %155 = vmatpush.bf16.msra.mxu1 %v321_v8 }
  0x14   :  { %328 = vmatpush.bf16.msra.mxu2 %v321_v8 }
  0x17   :  { %156 = vmatpush.bf16.msra.mxu1 %v320_v12 }
  0x18   :  { %329 = vmatpush.bf16.msra.mxu2 %v320_v12 }
  0x1a   :  { %284 = vmatmul.msk.bf16.gmra.mxu0 %vm48_vm1, %v42_v11 }
  0x1b   :  { %157 = vmatpush.bf16.msra.mxu1 %v319_v13 }
  0x1c   :  { %330 = vmatpush.bf16.msra.mxu2 %v319_v13 }
  0x1f   :  { %158 = vmatpush.bf16.msra.mxu1 %v318_v14 }
  0x20   :  { %331 = vmatpush.bf16.msra.mxu2 %v318_v14 }
  0x23   :  { %159 = vmatpush.bf16.msra.mxu1 %v317_v15 }
  0x24   :  { %332 = vmatpush.bf16.msra.mxu2 %v317_v15 }
  0x87   :  { %v68_v16 = vpop.f32.mrf.mxu0 }
  0x88   :  { %v69_v18 = vadd.f32 %v336_v17, %v68_v16 }
  0x8a   :  { %v78_v21 = vmax.f32 %v69_v18, 0.0 }
  0x8f   :  { %v70_v19 = vpop.f32.mrf.mxu0 }
  0x90   :  { %v71_v20 = vadd.f32 %v336_v17, %v70_v19 }
  0x92   :  { %v79_v22 = vmax.f32 %v71_v20, 0.0 }
  0x94   :  { %v82_v23 = vpack.c.bf16 %v79_v22, %v78_v21 }
  0x96   :  { %160 = vmatmul.bf16.vlgmr.msra.gmra.mxu1 %v82_v23 }
  0x97   :  { %v73_v24 = vpop.f32.mrf.mxu0 }
  0x98   :  { %v74_v25 = vadd.f32 %v336_v17, %v73_v24 }
  0x9a   :  { %v80_v28 = vmax.f32 %v74_v25, 0.0 }
  0x9f   :  { %v75_v26 = vpop.f32.mrf.mxu0 }
  0xa0   :  { %v76_v27 = vadd.f32 %v336_v17, %v75_v26 }
  0xa2   :  { %v81_v29 = vmax.f32 %v76_v27, 0.0 }
  0xa4   :  { %v83_v30 = vpack.c.bf16 %v81_v29, %v80_v28 }
  0xa6   :  { %165 = vmatmul.bf16.vlgmr.msra.gmra.mxu2 %v83_v30 }
 0x113   :  { %v161_v34 = vpop.f32.mrf.mxu1 }
 0x114   :  { %v162_v35 = vadd.f32 %v337_v33, %v161_v34 }
 0x116   :  { %v174_v36 = vsel %vm173_vm2, %v162_v35, -3.4028235e+38 }
 0x117   :  { %178 = vmax.xlane.f32.xlu0 %v174_v36 }
 0x11b   :  { %v163_v37 = vpop.f32.mrf.mxu1 }
 0x11c   :  { %v164_v38 = vadd.f32 %v337_v33, %v163_v37 }
 0x11e   :  { %v175_v39 = vsel %vm173_vm2, %v164_v38, -3.4028235e+38 }
 0x11f   :  { %180 = vmax.xlane.f32.xlu0 %v175_v39 }
 0x129   :  { %v166_v40 = vpop.f32.mrf.mxu2 }
 0x12a   :  { %v167_v41 = vadd.f32 %v337_v33, %v166_v40 }
 0x12c   :  { %v176_v42 = vsel %vm173_vm2, %v167_v41, -3.4028235e+38 }
 0x12d   :  { %182 = vmax.xlane.f32.xlu1 %v176_v42 }
 0x131   :  { %v168_v43 = vpop.f32.mrf.mxu2 }
 0x132   :  { %v169_v44 = vadd.f32 %v337_v33, %v168_v43 }
 0x134   :  { %v177_v45 = vsel %vm173_vm2, %v169_v44, -3.4028235e+38 }
 0x135   :  { %184 = vmax.xlane.f32.xlu1 %v177_v45 }
 0x18a   :  { %v179_v46 = vpop.xlane.xlu0 %178 }
 0x18b   :  { %v186_v47 = vsub.f32 %v162_v35, %v179_v46 }
 0x18d   :  { %v190_v48 = vsel %vm173_vm2, %v186_v47, 0.0 }
 0x18e   :  { %v194_v49 = vmul.f32 1.442695, %v190_v48 }
 0x190   :  { %338 = vpow2.f32 %v194_v49 }
 0x192   :  { %v181_v50 = vpop.xlane.xlu0 %180 }
 0x193   :  { %v187_v51 = vsub.f32 %v164_v38, %v181_v50 }
 0x195   :  { %v191_v52 = vsel %vm173_vm2, %v187_v51, 0.0 }
 0x196   :  { %v339_v53 = vpop.eup %338  ;;  %v196_v54 = vmul.f32 1.442695, %v191_v52 }
 0x197   :  { %v202_v55 = vsel %vm173_vm2, %v339_v53, 0.0 }
 0x198   :  { %340 = vpow2.f32 %v196_v54  ;;  %206 = vadd.xlane.f32.xlu2 %v202_v55 }
 0x19e   :  { %v341_v56 = vpop.eup %340 }
 0x19f   :  { %v203_v57 = vsel %vm173_vm2, %v341_v56, 0.0 }
 0x1a0   :  { %v183_v58 = vpop.xlane.xlu1 %182  ;;  %208 = vadd.xlane.f32.xlu2 %v203_v57 }
 0x1a1   :  { %v188_v59 = vsub.f32 %v167_v41, %v183_v58 }
 0x1a3   :  { %v192_v60 = vsel %vm173_vm2, %v188_v59, 0.0 }
 0x1a4   :  { %v198_v61 = vmul.f32 1.442695, %v192_v60 }
 0x1a6   :  { %342 = vpow2.f32 %v198_v61 }
 0x1a8   :  { %v185_v62 = vpop.xlane.xlu1 %184 }
 0x1a9   :  { %v189_v63 = vsub.f32 %v169_v44, %v185_v62 }
 0x1ab   :  { %v193_v0 = vsel %vm173_vm2, %v189_v63, 0.0 }
 0x1ac   :  { %v343_v1 = vpop.eup %342  ;;  %v200_v2 = vmul.f32 1.442695, %v193_v0 }
 0x1ad   :  { %v450_v3 = vsel %vm173_vm2, %v343_v1, 0.0 }
 0x1ae   :  { %344 = vpow2.f32 %v200_v2  ;;  %210 = vadd.xlane.f32.xlu0 %v450_v3 }
 0x1b4   :  { %v345_v4 = vpop.eup %344 }
 0x1b5   :  { %v454_v5 = vsel %vm173_vm2, %v345_v4, 0.0 }
 0x1b6   :  { %212 = vadd.xlane.f32.xlu1 %v454_v5 }
 0x20b   :  { %v207_v6 = vpop.xlane.xlu2 %206 }
 0x20c   :  { %346 = vrcp.f32 %v207_v6  ;;  %v225_v11 = vand.u32 2147483648, %v207_v6  ;;  %v223_v13 = vand.u32 2147483647, %v207_v6  ;;  %vm219_vm4 = vweird.f32 %v207_v6 }
 0x20e   :  { %v226_v16 = vor.u32 1.1754944e-38, %v225_v11  ;;  %vm224_vm6 = vcmp.eq.f32.partialorder %v223_v13, 8.507059e+37 }
 0x212   :  { %v347_v7 = vpop.eup %346 }
 0x213   :  { %v215_v8 = vmul.f32 %v347_v7, %v207_v6  ;;  %v209_v9 = vpop.xlane.xlu2 %208  ;;  %vm220_vm3 = vweird.f32 %v347_v7 }
 0x214   :  { %348 = vrcp.f32 %v209_v9  ;;  %vm221_vm5 = vmor %vm219_vm4, %vm220_vm3  ;;  %v240_v22 = vand.u32 2147483648, %v209_v9  ;;  %v238_v24 = vand.u32 2147483647, %v209_v9  ;;  %vm234_vm8 = vweird.f32 %v209_v9 }
 0x215   :  { %v216_v10 = vsub.f32 1.0, %v215_v8 }
 0x216   :  { %v241_v27 = vor.u32 1.1754944e-38, %v240_v22  ;;  %vm239_vm10 = vcmp.eq.f32.partialorder %v238_v24, 8.507059e+37 }
 0x217   :  { %v217_v12 = vmul.f32 %v347_v7, %v216_v10 }
 0x219   :  { %v218_v14 = vadd.f32 %v347_v7, %v217_v12 }
 0x21a   :  { %v349_v15 = vpop.eup %348 }
 0x21b   :  { %v222_v17 = vsel %vm221_vm5, %v347_v7, %v218_v14  ;;  %v230_v18 = vmul.f32 %v349_v15, %v209_v9  ;;  %vm235_vm7 = vweird.f32 %v349_v15 }
 0x21c   :  { %v227_v19 = vsel %vm224_vm6, %v226_v16, %v222_v17  ;;  %vm236_vm9 = vmor %vm234_vm8, %vm235_vm7 }
 0x21d   :  { %v228_v20 = vmul.f32 %v227_v19, %v202_v55  ;;  %v231_v21 = vsub.f32 1.0, %v230_v18 }
 0x21f   :  { %274 = vst [vmem:[%s476_s5] sm:$0xff] %v228_v20  ;;  %v232_v23 = vmul.f32 %v349_v15, %v231_v21 }
 0x221   :  { %v233_v25 = vadd.f32 %v349_v15, %v232_v23  ;;  %v211_v26 = vpop.xlane.xlu0 %210 }
 0x222   :  { %350 = vrcp.f32 %v211_v26  ;;  %v255_v35 = vand.u32 2147483648, %v211_v26  ;;  %v253_v37 = vand.u32 2147483647, %v211_v26  ;;  %vm249_vm12 = vweird.f32 %v211_v26 }
 0x223   :  { %v237_v28 = vsel %vm236_vm9, %v349_v15, %v233_v25 }
 0x224   :  { %v242_v29 = vsel %vm239_vm10, %v241_v27, %v237_v28  ;;  %v256_v40 = vor.u32 1.1754944e-38, %v255_v35  ;;  %vm254_vm14 = vcmp.eq.f32.partialorder %v253_v37, 8.507059e+37 }
 0x225   :  { %v243_v30 = vmul.f32 %v242_v29, %v203_v57 }
 0x227   :  { %275 = vst [vmem:[%s476_s5 + $0x8] sm:$0xff] %v243_v30 }
 0x228   :  { %v351_v31 = vpop.eup %350 }
 0x229   :  { %v245_v32 = vmul.f32 %v351_v31, %v211_v26  ;;  %v213_v33 = vpop.xlane.xlu1 %212  ;;  %vm250_vm11 = vweird.f32 %v351_v31 }
 0x22a   :  { %352 = vrcp.f32 %v213_v33  ;;  %vm251_vm13 = vmor %vm249_vm12, %vm250_vm11  ;;  %v270_v46 = vand.u32 2147483648, %v213_v33  ;;  %v268_v48 = vand.u32 2147483647, %v213_v33  ;;  %vm264_vm0 = vweird.f32 %v213_v33 }
 0x22b   :  { %v246_v34 = vsub.f32 1.0, %v245_v32 }
 0x22c   :  { %v271_v50 = vor.u32 1.1754944e-38, %v270_v46  ;;  %vm269_vm2 = vcmp.eq.f32.partialorder %v268_v48, 8.507059e+37 }
 0x22d   :  { %v247_v36 = vmul.f32 %v351_v31, %v246_v34 }
 0x22f   :  { %v248_v38 = vadd.f32 %v351_v31, %v247_v36 }
 0x230   :  { %v353_v39 = vpop.eup %352 }
 0x231   :  { %v252_v41 = vsel %vm251_vm13, %v351_v31, %v248_v38  ;;  %v260_v42 = vmul.f32 %v353_v39, %v213_v33  ;;  %vm265_vm15 = vweird.f32 %v353_v39 }
 0x232   :  { %v257_v43 = vsel %vm254_vm14, %v256_v40, %v252_v41  ;;  %vm266_vm1 = vmor %vm264_vm0, %vm265_vm15 }
 0x233   :  { %v258_v44 = vmul.f32 %v257_v43, %v450_v3  ;;  %v261_v45 = vsub.f32 1.0, %v260_v42 }
 0x235   :  { %276 = vst [vmem:[%s476_s5 + $0x10] sm:$0xff] %v258_v44  ;;  %v262_v47 = vmul.f32 %v353_v39, %v261_v45 }
 0x237   :  { %v263_v49 = vadd.f32 %v353_v39, %v262_v47 }
 0x239   :  { %v267_v51 = vsel %vm266_vm1, %v353_v39, %v263_v49 }
 0x23a   :  { %v272_v52 = vsel %vm269_vm2, %v271_v50, %v267_v51 }
 0x23b   :  { %v273_v53 = vmul.f32 %v272_v52, %v454_v5 }
 0x23d   :  { %277 = vst [vmem:[%s476_s5 + $0x18] sm:$0xff] %v273_v53 }
 0x23e   :  { %282 = vsyncpa [#allocation3], 1 }

</bundles_post_ra>
